<compile_context>
chip_gen: v7x
topology: tpu7x:2x2x1
jax: 0.10.0
libtpu: 0.0.40
codegen_flags: <defaults>
</compile_context>

<pallas_src>
import jax
import jax.numpy as jnp
from jax.experimental import pallas as pl
from jax.experimental.pallas import tpu as pltpu


# ---------------------------------------------------------------------------
# helpers
# ---------------------------------------------------------------------------

def _round_up(n, m):
    return ((n + m - 1) // m) * m


def _pick_row_tile(n, max_tile=2048):
    """128-aligned row tiles: whole array in one step when small, otherwise
    >= 2 grid steps (keeps both v7x TensorCores busy) of <= ~max_tile rows."""
    n_al = _round_up(max(n, 128), 128)
    if n_al <= 1024:
        return n_al, n_al
    ntiles = max(2, -(-n_al // max_tile))
    tile = _round_up(-(-n_al // ntiles), 128)
    return tile, tile * ntiles


def _pad_rows(a, n_padded):
    pad = n_padded - a.shape[0]
    if pad == 0:
        return a
    return jnp.pad(a, ((0, pad),) + ((0, 0),) * (a.ndim - 1))


# ---------------------------------------------------------------------------
# Kernel 1: theta_1 for ALL hops, hoisted out of the hop loop
#           h1_all[l] = x @ W1_l^T        (one launch, x read once)
# ---------------------------------------------------------------------------

def _make_theta1_kernel(hop):
    def kernel(x_ref, w1_ref, o_ref):
        x = x_ref[...]
        for l in range(hop):                      # static unroll over hops
            o_ref[l] = jnp.dot(
                x, w1_ref[l], preferred_element_type=jnp.float32
            ).astype(o_ref.dtype)
    return kernel


def theta1_all_hops(x_pad, w1_stack, *, tile):
    n_pad, d_in = x_pad.shape
    hop, _, h = w1_stack.shape
    return pl.pallas_call(
        _make_theta1_kernel(hop),
        out_shape=jax.ShapeDtypeStruct((hop, n_pad, h), jnp.float32),
        grid_spec=pltpu.PrefetchScalarGridSpec(
            num_scalar_prefetch=0,
            grid=(n_pad // tile,),
            in_specs=[
                pl.BlockSpec((tile, d_in), lambda i: (i, 0)),
                pl.BlockSpec((hop, d_in, h), lambda i: (0, 0, 0)),  # resident
            ],
            out_specs=pl.BlockSpec((hop, tile, h), lambda i: (0, i, 0)),
        ),
        compiler_params=pltpu.CompilerParams(
            dimension_semantics=("parallel",)),
    )(x_pad, w1_stack)


# ---------------------------------------------------------------------------
# Kernel 2: fused S2V hop
#   ne = relu(h1 + nb_aggr @ W2^T + p*v3p + m*v3m)
#   (last hop also emits the per-node theta_7 readout term:
#      q7 = sum_h relu(ne @ W7^T)[:,h] * w5b[0,h] )
# ---------------------------------------------------------------------------

def _make_hop_kernel(has_nb, fuse_readout):
    def kernel(*refs):
        it = iter(refs)
        h1_ref = next(it)
        nb_ref = next(it) if has_nb else None
        pm_ref = next(it)
        v3p_ref = next(it)
        v3m_ref = next(it)
        w2t_ref = next(it) if has_nb else None
        w7t_ref = next(it) if fuse_readout else None
        w5b_ref = next(it) if fuse_readout else None
        ne_ref = next(it)
        q_ref = next(it) if fuse_readout else None

        acc = h1_ref[0].astype(jnp.float32)       # theta_1(x), precomputed
        if has_nb:                                # theta_2(sum_nb node_emb)
            acc = acc + jnp.dot(nb_ref[...], w2t_ref[...],
                                preferred_element_type=jnp.float32)
        # theta_3(edge aggregation) collapsed to two broadcast FMAs (VPU):
        pm = pm_ref[...].astype(jnp.float32)      # (tile, 2)
        acc = acc + pm[:, 0:1] * v3p_ref[...] + pm[:, 1:2] * v3m_ref[...]
        ne = jnp.maximum(acc, 0.0)
        ne_ref[...] = ne.astype(ne_ref.dtype)

        if fuse_readout:                          # fused theta_7 / w5b readout
            r = jnp.maximum(
                jnp.dot(ne.astype(w7t_ref.dtype), w7t_ref[...],
                        preferred_element_type=jnp.float32), 0.0)
            # TODO(synk): the (tile,1) q write is still a masked store; make it
            # lane-dense once the fully fused hop loop (scalar-prefetched,
            # row-sorted edge lists) lands.
            q_ref[...] = jnp.sum(r * w5b_ref[...], axis=-1, keepdims=True
                                 ).astype(q_ref.dtype)
    return kernel


def s2v_hop(h1_all, hop_idx, nb_aggr, pm, w2t, v3p, v3m, *,
            w7t=None, w5b=None, tile, mxu_dtype=jnp.float32):
    _, n_pad, h = h1_all.shape
    has_nb = nb_aggr is not None
    fuse_readout = w7t is not None

    inputs = [h1_all]
    in_specs = [pl.BlockSpec((1, tile, h),
                             lambda i, hop_idx=hop_idx: (hop_idx, i, 0))]
    if has_nb:
        inputs.append(nb_aggr.astype(mxu_dtype))
        in_specs.append(pl.BlockSpec((tile, h), lambda i: (i, 0)))
    inputs += [pm, v3p, v3m]
    in_specs += [pl.BlockSpec((tile, 2), lambda i: (i, 0)),
                 pl.BlockSpec((1, h), lambda i: (0, 0)),
                 pl.BlockSpec((1, h), lambda i: (0, 0))]
    if has_nb:
        inputs.append(w2t.astype(mxu_dtype))
        in_specs.append(pl.BlockSpec((h, h), lambda i: (0, 0)))   # resident
    if fuse_readout:
        inputs += [w7t.astype(mxu_dtype), w5b]
        in_specs += [pl.BlockSpec((h, h), lambda i: (0, 0)),
                     pl.BlockSpec((1, h), lambda i: (0, 0))]

    out_shape = [jax.ShapeDtypeStruct((n_pad, h), jnp.float32)]
    out_specs = [pl.BlockSpec((tile, h), lambda i: (i, 0))]
    if fuse_readout:
        out_shape.append(jax.ShapeDtypeStruct((n_pad, 1), jnp.float32))
        out_specs.append(pl.BlockSpec((tile, 1), lambda i: (i, 0)))

    return pl.pallas_call(
        _make_hop_kernel(has_nb, fuse_readout),
        out_shape=tuple(out_shape) if fuse_readout else out_shape[0],
        grid_spec=pltpu.PrefetchScalarGridSpec(
            num_scalar_prefetch=0,
            grid=(n_pad // tile,),
            in_specs=in_specs,
            out_specs=tuple(out_specs) if fuse_readout else out_specs[0],
        ),
        compiler_params=pltpu.CompilerParams(
            dimension_semantics=("parallel",)),
    )(*inputs)


# ---------------------------------------------------------------------------
# Full S2VDQN forward
# ---------------------------------------------------------------------------

def s2vdqn_forward(x, edge_index, edge_attr, batch, params, num_graphs, *,
                   mxu_dtype=jnp.float32):
    # mxu_dtype=jnp.bfloat16 halves matmul-operand DMA on v6e/v7x (re-validate
    # tolerance); elementwise math stays f32 regardless (v5e-safe).
    n = x.shape[0]
    hop = len(params["layers"])
    h = params["layers"][0]["w1"].shape[0]
    row, col = edge_index[0], edge_index[1]
    tile, n_pad = _pick_row_tile(n)

    x_pad = _pad_rows(x.astype(jnp.float32), n_pad)

    # theta_1 for every hop, one Pallas launch (hoisted out of the hop loop).
    w1_stack = jnp.stack([lp["w1"].T for lp in params["layers"]], axis=0)
    h1_all = theta1_all_hops(x_pad, w1_stack, tile=tile)       # (hop, n_pad, h)

    # Edge aggregation collapsed: scatter two per-edge SCALARS, once.
    a = edge_attr[:, 0].astype(jnp.float32)
    pm = jnp.zeros((n_pad, 2), jnp.float32).at[row].add(
        jnp.stack([jnp.maximum(a, 0.0), jnp.maximum(-a, 0.0)], axis=-1))

    w5a = params["w5"][:, :h]        # theta_5 half acting on theta_6(pooled)
    w5b = params["w5"][:, h:]        # theta_5 half acting on theta_7(node_emb)
    w7t = params["w7"].T

    node_embedding = None
    q7 = None
    for l, lp in enumerate(params["layers"]):
        # tiny, param-only precompute (H x H): relu(+-w4) pushed through theta_3
        v3p = jnp.maximum(lp["w4"][:, 0], 0.0)[None, :] @ lp["w3"].T   # (1, h)
        v3m = jnp.maximum(-lp["w4"][:, 0], 0.0)[None, :] @ lp["w3"].T  # (1, h)
        last = l == hop - 1
        if node_embedding is None:
            nb_aggr = None           # first hop: node_embedding == 0
        else:
            # TODO(synk): data-dependent neighbour gather + scatter-add stays in
            # XLA; fusing it needs row-sorted edges via scalar prefetch and an
            # in-kernel segment sum (left for a follow-up restructure).
            nb_aggr = jnp.zeros((n_pad, h), jnp.float32).at[row].add(
                node_embedding[col])
        outs = s2v_hop(h1_all, l, nb_aggr, pm, lp["w2"].T, v3p, v3m,
                       w7t=w7t if last else None,
                       w5b=w5b if last else None,
                       tile=tile, mxu_dtype=mxu_dtype)
        if last:
            node_embedding, q7 = outs
        else:
            node_embedding = outs

    ne = node_embedding[:n]
    # global_add_pool (data-dependent scatter -> XLA), then theta_6 collapsed to
    # per-GRAPH work: (B,H) matmul instead of an N x H matmul + N x H gather.
    pooled = jnp.zeros((num_graphs, h), jnp.float32).at[batch].add(ne)
    qa = jnp.maximum(pooled @ params["w6"].T, 0.0) @ w5a.T     # (B, 1), tiny
    return q7[:n] + qa[batch] + params["b5"][None, :]


# ---------------------------------------------------------------------------
# Pure-JAX reference (mirrors the PyTorch module exactly)
# ---------------------------------------------------------------------------

def s2vdqn_reference(x, edge_index, edge_attr, batch, params, num_graphs):
    n = x.shape[0]
    h = params["layers"][0]["w1"].shape[0]
    row, col = edge_index[0], edge_index[1]
    ne = jnp.zeros((n, h), x.dtype)
    for lp in params["layers"]:
        nfe = x @ lp["w1"].T
        nb = jnp.zeros((n, h), x.dtype).at[row].add(ne[col])
        efe = jnp.maximum(edge_attr @ lp["w4"].T, 0.0)
        ea = jnp.zeros((n, h), x.dtype).at[row].add(efe)
        ne = jnp.maximum(nfe + nb @ lp["w2"].T + ea @ lp["w3"].T, 0.0)
    pooled = jnp.zeros((num_graphs, h), x.dtype).at[batch].add(ne)
    s = pooled @ params["w6"].T
    cat = jnp.concatenate([s[batch], ne @ params["w7"].T], axis=-1)
    return jnp.maximum(cat, 0.0) @ params["w5"].T + params["b5"][None, :]


if __name__ == "__main__":
    key = jax.random.PRNGKey(0)
    N, E, D_IN, H, HOP, B = 60, 200, 4, 32, 3, 2

    keys = jax.random.split(key, 8 + 4 * HOP)
    it = iter(keys)

    x = jax.random.normal(next(it), (N, D_IN), jnp.float32)
    edge_index = jax.random.randint(next(it), (2, E), 0, N, dtype=jnp.int32)
    edge_attr = jax.random.normal(next(it), (E, 1), jnp.float32)
    batch = jnp.concatenate([jnp.zeros((N // 2,), jnp.int32),
                             jnp.ones((N - N // 2,), jnp.int32)])

    def u(k, shape, fan_in):
        bound = 1.0 / jnp.sqrt(float(fan_in))
        return jax.random.uniform(k, shape, jnp.float32, -bound, bound)

    layers = []
    for _ in range(HOP):
        layers.append(dict(
            w1=u(next(it), (H, D_IN), D_IN),
            w2=u(next(it), (H, H), H),
            w3=u(next(it), (H, H), H),
            w4=u(next(it), (H, 1), 1),
        ))
    params = dict(
        layers=layers,
        w5=u(next(it), (1, 2 * H), 2 * H),
        b5=u(next(it), (1,), 2 * H),
        w6=u(next(it), (H, H), H),
        w7=u(next(it), (H, H), H),
    )

    out = s2vdqn_forward(x, edge_index, edge_attr, batch, params, num_graphs=B)
    out = jax.block_until_ready(out)

    ref = s2vdqn_reference(x, edge_index, edge_attr, batch, params, num_graphs=B)
    assert out.shape == (N, 1)
    assert jnp.allclose(out, ref, atol=1e-3, rtol=1e-3), "mismatch vs reference"

    print("KERNEL_OK")
</pallas_src>

<mosaic_0001>
module attributes {stable_mosaic.version = 11 : i64} {
  func.func @kernel(%arg0: i32, %arg1: memref<128x4xf32, #tpu.memory_space<vmem>>, %arg2: memref<3x4x32xf32, #tpu.memory_space<vmem>>, %arg3: memref<3x128x32xf32, #tpu.memory_space<vmem>>) attributes {dimension_semantics = [#tpu.dimension_semantics<parallel>], iteration_bounds = array<i64: 1>, scalar_prefetch = 0 : i64, scratch_operands = 0 : i64, tpu.core_type = #tpu.core_type<tc>, window_params = [{transform_indices = @transform_0, window_bounds = array<i64: 128, 4>}, {pipeline_mode = #tpu.pipeline_mode<synchronous>, transform_indices = @transform_1, window_bounds = array<i64: 3, 4, 32>}, {transform_indices = @transform_2, window_bounds = array<i64: 3, 128, 32>}]} {
    %c0 = arith.constant 0 : index
    %c0_0 = arith.constant 0 : index
    %0 = vector.load %arg1[%c0, %c0_0] : memref<128x4xf32, #tpu.memory_space<vmem>>, vector<128x4xf32>
    %c0_1 = arith.constant 0 : index
    %c0_2 = arith.constant 0 : index
    %c0_3 = arith.constant 0 : index
    %1 = vector.load %arg2[%c0_1, %c0_2, %c0_3] : memref<3x4x32xf32, #tpu.memory_space<vmem>>, vector<1x4x32xf32>
    %2 = vector.shape_cast %1 : vector<1x4x32xf32> to vector<4x32xf32>
    %cst = arith.constant dense<0.000000e+00> : vector<128x32xf32>
    %3 = tpu.matmul %0, %2, %cst {dimension_numbers = #tpu.dot_dimension_numbers<[1], [0], [0], [1], [0, 0, 1, 1], [], []>} : vector<128x4xf32>, vector<4x32xf32>, vector<128x32xf32> -> vector<128x32xf32>
    %c0_4 = arith.constant 0 : index
    %c0_5 = arith.constant 0 : index
    %c0_6 = arith.constant 0 : index
    %4 = vector.load %arg3[%c0_4, %c0_5, %c0_6] : memref<3x128x32xf32, #tpu.memory_space<vmem>>, vector<1x128x32xf32>
    %5 = vector.shape_cast %4 : vector<1x128x32xf32> to vector<128x32xf32>
    %6 = vector.shape_cast %3 : vector<128x32xf32> to vector<1x128x32xf32>
    tpu.vector_store %arg3[%c0_4, %c0_5, %c0_6], %6 {strides = array<i32>} : memref<3x128x32xf32, #tpu.memory_space<vmem>>, vector<1x128x32xf32>,
    %c1 = arith.constant 1 : index
    %c0_7 = arith.constant 0 : index
    %c0_8 = arith.constant 0 : index
    %7 = vector.load %arg2[%c1, %c0_7, %c0_8] : memref<3x4x32xf32, #tpu.memory_space<vmem>>, vector<1x4x32xf32>
    %8 = vector.shape_cast %7 : vector<1x4x32xf32> to vector<4x32xf32>
    %cst_9 = arith.constant dense<0.000000e+00> : vector<128x32xf32>
    %9 = tpu.matmul %0, %8, %cst_9 {dimension_numbers = #tpu.dot_dimension_numbers<[1], [0], [0], [1], [0, 0, 1, 1], [], []>} : vector<128x4xf32>, vector<4x32xf32>, vector<128x32xf32> -> vector<128x32xf32>
    %c1_10 = arith.constant 1 : index
    %c0_11 = arith.constant 0 : index
    %c0_12 = arith.constant 0 : index
    %10 = vector.load %arg3[%c1_10, %c0_11, %c0_12] : memref<3x128x32xf32, #tpu.memory_space<vmem>>, vector<1x128x32xf32>
    %11 = vector.shape_cast %10 : vector<1x128x32xf32> to vector<128x32xf32>
    %12 = vector.shape_cast %9 : vector<128x32xf32> to vector<1x128x32xf32>
    tpu.vector_store %arg3[%c1_10, %c0_11, %c0_12], %12 {strides = array<i32>} : memref<3x128x32xf32, #tpu.memory_space<vmem>>, vector<1x128x32xf32>,
    %c2 = arith.constant 2 : index
    %c0_13 = arith.constant 0 : index
    %c0_14 = arith.constant 0 : index
    %13 = vector.load %arg2[%c2, %c0_13, %c0_14] : memref<3x4x32xf32, #tpu.memory_space<vmem>>, vector<1x4x32xf32>
    %14 = vector.shape_cast %13 : vector<1x4x32xf32> to vector<4x32xf32>
    %cst_15 = arith.constant dense<0.000000e+00> : vector<128x32xf32>
    %15 = tpu.matmul %0, %14, %cst_15 {dimension_numbers = #tpu.dot_dimension_numbers<[1], [0], [0], [1], [0, 0, 1, 1], [], []>} : vector<128x4xf32>, vector<4x32xf32>, vector<128x32xf32> -> vector<128x32xf32>
    %c2_16 = arith.constant 2 : index
    %c0_17 = arith.constant 0 : index
    %c0_18 = arith.constant 0 : index
    %16 = vector.load %arg3[%c2_16, %c0_17, %c0_18] : memref<3x128x32xf32, #tpu.memory_space<vmem>>, vector<1x128x32xf32>
    %17 = vector.shape_cast %16 : vector<1x128x32xf32> to vector<128x32xf32>
    %18 = vector.shape_cast %15 : vector<128x32xf32> to vector<1x128x32xf32>
    tpu.vector_store %arg3[%c2_16, %c0_17, %c0_18], %18 {strides = array<i32>} : memref<3x128x32xf32, #tpu.memory_space<vmem>>, vector<1x128x32xf32>,
    return
  }
  func.func @transform_0(%arg0: i32) -> (i32, i32) {
    %c0_i32 = arith.constant 0 : i32
    %c0_i32_0 = arith.constant 0 : i32
    return %arg0, %c0_i32 : i32, i32
  }
  func.func @transform_1(%arg0: i32) -> (i32, i32, i32) {
    %c0_i32 = arith.constant 0 : i32
    %c0_i32_0 = arith.constant 0 : i32
    %c0_i32_1 = arith.constant 0 : i32
    %c0_i32_2 = arith.constant 0 : i32
    return %c0_i32, %c0_i32_0, %c0_i32_1 : i32, i32, i32
  }
  func.func @transform_2(%arg0: i32) -> (i32, i32, i32) {
    %c0_i32 = arith.constant 0 : i32
    %c0_i32_0 = arith.constant 0 : i32
    %c0_i32_1 = arith.constant 0 : i32
    return %c0_i32, %arg0, %c0_i32_0 : i32, i32, i32
  }
}

</mosaic_0001>

<bundles_post_ra>
// kernel: tpu_custom_call.1
= control target key start
LH: loop header
LB: loop body
LE: loop exit
PB: predicated region body
PF: predicated region fallthrough
CT: control target
= control target key end

     0   :  { %vm77_vm0 = vcmask 1043456   ;;  %vm28_vm1 = vcmask 31744   ;;  %vm226_vm2 = vcmask 261120   ;;  %s1117_s1 = inlined_call_operand.vmem [shape: f32[3,4,32], index: 1, kind: input, shape index: {}]   ;;  %s1118_s0 = inlined_call_operand.vmem [shape: f32[128,4], index: 0, kind: input, shape index: {}]   ;;  %s1119_s2 = inlined_call_operand.vmem [shape: f32[3,128,32], index: 2, kind: output, shape index: {}]  }
   0x1   :  { %v27_v0 = vld [vmem:[%s1117_s1] sm:$0xf]  ;;  %v12_v3 = vld [vmem:[%s1118_s0 + $0x8] sm:$0xff]  ;;  %v598_v5 = vld [vmem:[%s1117_s1 + $0x4] sm:$0xf] }
   0x2   :  { %v11_v1 = vld [vmem:[%s1118_s0] sm:$0xff]  ;;  %717 = vmatprep.subr.msk.mxu0 %vm77_vm0, %v27_v0  ;;  %795 = vmatprep.subr.msk.mxu1 %vm77_vm0, %v27_v0  ;;  %v20_v4 = vld [vmem:[%s1118_s0 + $0x48] sm:$0xff]  ;;  %v13_v7 = vld [vmem:[%s1118_s0 + $0x10] sm:$0xff] }
   0x3   :  { %v19_v2 = vld [vmem:[%s1118_s0 + $0x40] sm:$0xff]  ;;  %718 = vmatpush3.msk.msra.mxu0 %vm77_vm0, %v27_v0  ;;  %796 = vmatpush3.msk.msra.mxu1 %vm77_vm0, %v27_v0  ;;  %v632_v6 = vld [vmem:[%s1117_s1 + $0x8] sm:$0xf]  ;;  %v21_v8 = vld [vmem:[%s1118_s0 + $0x50] sm:$0xff] }
   0x4   :  { %719 = vmatprep.mubr.msk.f32.mxu0 %vm28_vm1, %v11_v1  ;;  %731 = vmatprep.mubr.msk.f32.mxu1 %vm28_vm1, %v19_v2  ;;  %v14_v9 = vld [vmem:[%s1118_s0 + $0x18] sm:$0xff]  ;;  %v15_v11 = vld [vmem:[%s1118_s0 + $0x20] sm:$0xff]  ;;  %v16_v13 = vld [vmem:[%s1118_s0 + $0x28] sm:$0xff] }
   0x5   :  { %720 = vmatmul.mubr.msk.f32.vlgmr.msra.gmra.mrb[0].mxu0 %vm28_vm1, %v12_v3  ;;  %732 = vmatmul.mubr.msk.f32.vlgmr.msra.gmra.mrb[0].mxu1 %vm28_vm1, %v20_v4  ;;  %v22_v10 = vld [vmem:[%s1118_s0 + $0x58] sm:$0xff]  ;;  %v23_v12 = vld [vmem:[%s1118_s0 + $0x60] sm:$0xff]  ;;  %v24_v14 = vld [vmem:[%s1118_s0 + $0x68] sm:$0xff] }
   0x6   :  { %743 = vmatprep.subr.msk.mxu1 %vm77_vm0, %v598_v5  ;;  %769 = vmatprep.subr.msk.mxu0 %vm77_vm0, %v632_v6  ;;  %v17_v15 = vld [vmem:[%s1118_s0 + $0x30] sm:$0xff]  ;;  %v18_v17 = vld [vmem:[%s1118_s0 + $0x38] sm:$0xff] }
   0x7   :  { %744 = vmatpush3.msk.msra.mxu1 %vm77_vm0, %v598_v5  ;;  %770 = vmatpush3.msk.msra.mxu0 %vm77_vm0, %v632_v6  ;;  %v25_v16 = vld [vmem:[%s1118_s0 + $0x70] sm:$0xff]  ;;  %v26_v18 = vld [vmem:[%s1118_s0 + $0x78] sm:$0xff] }
   0x8   :  { %722 = vmatprep.mubr.msk.f32.mxu0 %vm28_vm1, %v13_v7  ;;  %734 = vmatprep.mubr.msk.f32.mxu1 %vm28_vm1, %v21_v8 }
   0x9   :  { %723 = vmatmul.mubr.msk.f32.gmra.mrb[2].mxu0 %vm28_vm1, %v14_v9  ;;  %735 = vmatmul.mubr.msk.f32.gmra.mrb[2].mxu1 %vm28_vm1, %v22_v10 }
   0xa   :  { %725 = vmatprep.mubr.msk.f32.mxu0 %vm28_vm1, %v15_v11  ;;  %737 = vmatprep.mubr.msk.f32.mxu1 %vm28_vm1, %v23_v12 }
   0xd   :  { %726 = vmatmul.mubr.msk.f32.gmra.mrb[4].mxu0 %vm28_vm1, %v16_v13  ;;  %738 = vmatmul.mubr.msk.f32.gmra.mrb[4].mxu1 %vm28_vm1, %v24_v14 }
   0xe   :  { %728 = vmatprep.mubr.msk.f32.mxu0 %vm28_vm1, %v17_v15  ;;  %740 = vmatprep.mubr.msk.f32.mxu1 %vm28_vm1, %v25_v16 }
  0x11   :  { %729 = vmatmul.mubr.msk.f32.gmra.mrb[6].mxu0 %vm28_vm1, %v18_v17  ;;  %741 = vmatmul.mubr.msk.f32.gmra.mrb[6].mxu1 %vm28_vm1, %v26_v18 }
  0x12   :  { %745 = vmatprep.mubr.msk.f32.mxu1 %vm28_vm1, %v11_v1  ;;  %771 = vmatprep.mubr.msk.f32.mxu0 %vm28_vm1, %v11_v1 }
  0x15   :  { %746 = vmatmul.mubr.msk.f32.vlgmr.msra.gmra.mrb[8].mxu1 %vm28_vm1, %v12_v3  ;;  %772 = vmatmul.mubr.msk.f32.vlgmr.msra.gmra.mrb[8].mxu0 %vm28_vm1, %v12_v3 }
  0x16   :  { %748 = vmatprep.mubr.msk.f32.mxu1 %vm28_vm1, %v13_v7  ;;  %774 = vmatprep.mubr.msk.f32.mxu0 %vm28_vm1, %v13_v7 }
  0x19   :  { %749 = vmatmul.mubr.msk.f32.gmra.mrb[10].mxu1 %vm28_vm1, %v14_v9  ;;  %775 = vmatmul.mubr.msk.f32.gmra.mrb[10].mxu0 %vm28_vm1, %v14_v9 }
  0x1a   :  { %751 = vmatprep.mubr.msk.f32.mxu1 %vm28_vm1, %v15_v11  ;;  %777 = vmatprep.mubr.msk.f32.mxu0 %vm28_vm1, %v15_v11 }
  0x1d   :  { %752 = vmatmul.mubr.msk.f32.gmra.mrb[12].mxu1 %vm28_vm1, %v16_v13  ;;  %778 = vmatmul.mubr.msk.f32.gmra.mrb[12].mxu0 %vm28_vm1, %v16_v13 }
  0x1e   :  { %754 = vmatprep.mubr.msk.f32.mxu1 %vm28_vm1, %v17_v15  ;;  %780 = vmatprep.mubr.msk.f32.mxu0 %vm28_vm1, %v17_v15 }
  0x21   :  { %755 = vmatmul.mubr.msk.f32.gmra.mrb[14].mxu1 %vm28_vm1, %v18_v17  ;;  %781 = vmatmul.mubr.msk.f32.gmra.mrb[14].mxu0 %vm28_vm1, %v18_v17 }
  0x22   :  { %757 = vmatprep.mubr.msk.f32.mxu1 %vm28_vm1, %v19_v2  ;;  %783 = vmatprep.mubr.msk.f32.mxu0 %vm28_vm1, %v19_v2 }
  0x25   :  { %758 = vmatmul.mubr.msk.f32.gmra.mrb[16].mxu1 %vm28_vm1, %v20_v4  ;;  %784 = vmatmul.mubr.msk.f32.gmra.mrb[16].mxu0 %vm28_vm1, %v20_v4 }
  0x26   :  { %760 = vmatprep.mubr.msk.f32.mxu1 %vm28_vm1, %v21_v8  ;;  %786 = vmatprep.mubr.msk.f32.mxu0 %vm28_vm1, %v21_v8 }
  0x29   :  { %761 = vmatmul.mubr.msk.f32.gmra.mrb[18].mxu1 %vm28_vm1, %v22_v10  ;;  %787 = vmatmul.mubr.msk.f32.gmra.mrb[18].mxu0 %vm28_vm1, %v22_v10 }
  0x2a   :  { %763 = vmatprep.mubr.msk.f32.mxu1 %vm28_vm1, %v23_v12  ;;  %789 = vmatprep.mubr.msk.f32.mxu0 %vm28_vm1, %v23_v12 }
  0x2d   :  { %764 = vmatmul.mubr.msk.f32.gmra.mrb[20].mxu1 %vm28_vm1, %v24_v14  ;;  %790 = vmatmul.mubr.msk.f32.gmra.mrb[20].mxu0 %vm28_vm1, %v24_v14 }
  0x2e   :  { %766 = vmatprep.mubr.msk.f32.mxu1 %vm28_vm1, %v25_v16  ;;  %792 = vmatprep.mubr.msk.f32.mxu0 %vm28_vm1, %v25_v16 }
  0x31   :  { %767 = vmatmul.mubr.msk.f32.gmra.mrb[22].mxu1 %vm28_vm1, %v26_v18  ;;  %793 = vmatmul.mubr.msk.f32.gmra.mrb[22].mxu0 %vm28_vm1, %v26_v18 }
  0xd8   :  { %v721_v19 = vpop.f32.mrb[0].mxu0  ;;  %v733_v20 = vpop.f32.mrb[0].mxu1 }
  0xd9   :  { %228 = vst.msk [vmem:[%s1119_s2 + $0x8] sm:$0xff] %vm226_vm2, %v721_v19  ;;  %236 = vst.msk [vmem:[%s1119_s2 + $0x48] sm:$0xff] %vm226_vm2, %v733_v20  ;;  %v147_v21 = vpop.f32.mrb[1].mxu0  ;;  %v187_v22 = vpop.f32.mrb[1].mxu1 }
  0xda   :  { %227 = vst.msk [vmem:[%s1119_s2] sm:$0xff] %vm226_vm2, %v147_v21  ;;  %235 = vst.msk [vmem:[%s1119_s2 + $0x40] sm:$0xff] %vm226_vm2, %v187_v22 }
  0xdc   :  { %v724_v23 = vpop.f32.mrb[2].mxu0  ;;  %v736_v24 = vpop.f32.mrb[2].mxu1 }
  0xdd   :  { %230 = vst.msk [vmem:[%s1119_s2 + $0x18] sm:$0xff] %vm226_vm2, %v724_v23  ;;  %238 = vst.msk [vmem:[%s1119_s2 + $0x58] sm:$0xff] %vm226_vm2, %v736_v24  ;;  %v157_v25 = vpop.f32.mrb[3].mxu0  ;;  %v197_v26 = vpop.f32.mrb[3].mxu1 }
  0xde   :  { %229 = vst.msk [vmem:[%s1119_s2 + $0x10] sm:$0xff] %vm226_vm2, %v157_v25  ;;  %237 = vst.msk [vmem:[%s1119_s2 + $0x50] sm:$0xff] %vm226_vm2, %v197_v26 }
  0xe0   :  { %v727_v27 = vpop.f32.mrb[4].mxu0  ;;  %v739_v28 = vpop.f32.mrb[4].mxu1 }
  0xe1   :  { %232 = vst.msk [vmem:[%s1119_s2 + $0x28] sm:$0xff] %vm226_vm2, %v727_v27  ;;  %240 = vst.msk [vmem:[%s1119_s2 + $0x68] sm:$0xff] %vm226_vm2, %v739_v28  ;;  %v167_v29 = vpop.f32.mrb[5].mxu0  ;;  %v207_v30 = vpop.f32.mrb[5].mxu1 }
  0xe2   :  { %231 = vst.msk [vmem:[%s1119_s2 + $0x20] sm:$0xff] %vm226_vm2, %v167_v29  ;;  %239 = vst.msk [vmem:[%s1119_s2 + $0x60] sm:$0xff] %vm226_vm2, %v207_v30 }
  0xe4   :  { %v730_v31 = vpop.f32.mrb[6].mxu0  ;;  %v742_v32 = vpop.f32.mrb[6].mxu1 }
  0xe5   :  { %234 = vst.msk [vmem:[%s1119_s2 + $0x38] sm:$0xff] %vm226_vm2, %v730_v31  ;;  %242 = vst.msk [vmem:[%s1119_s2 + $0x78] sm:$0xff] %vm226_vm2, %v742_v32  ;;  %v177_v33 = vpop.f32.mrb[7].mxu0  ;;  %v217_v34 = vpop.f32.mrb[7].mxu1 }
  0xe6   :  { %233 = vst.msk [vmem:[%s1119_s2 + $0x30] sm:$0xff] %vm226_vm2, %v177_v33  ;;  %241 = vst.msk [vmem:[%s1119_s2 + $0x70] sm:$0xff] %vm226_vm2, %v217_v34 }
  0xe8   :  { %v747_v35 = vpop.f32.mrb[8].mxu1  ;;  %v773_v36 = vpop.f32.mrb[8].mxu0 }
  0xe9   :  { %617 = vst.msk [vmem:[%s1119_s2 + $0x88] sm:$0xff] %vm226_vm2, %v747_v35  ;;  %651 = vst.msk [vmem:[%s1119_s2 + $0x108] sm:$0xff] %vm226_vm2, %v773_v36  ;;  %v314_v37 = vpop.f32.mrb[9].mxu1  ;;  %v481_v38 = vpop.f32.mrb[9].mxu0 }
  0xea   :  { %616 = vst.msk [vmem:[%s1119_s2 + $0x80] sm:$0xff] %vm226_vm2, %v314_v37  ;;  %650 = vst.msk [vmem:[%s1119_s2 + $0x100] sm:$0xff] %vm226_vm2, %v481_v38 }
  0xec   :  { %v750_v39 = vpop.f32.mrb[10].mxu1  ;;  %v776_v40 = vpop.f32.mrb[10].mxu0 }
  0xed   :  { %619 = vst.msk [vmem:[%s1119_s2 + $0x98] sm:$0xff] %vm226_vm2, %v750_v39  ;;  %653 = vst.msk [vmem:[%s1119_s2 + $0x118] sm:$0xff] %vm226_vm2, %v776_v40  ;;  %v324_v41 = vpop.f32.mrb[11].mxu1  ;;  %v491_v42 = vpop.f32.mrb[11].mxu0 }
  0xee   :  { %618 = vst.msk [vmem:[%s1119_s2 + $0x90] sm:$0xff] %vm226_vm2, %v324_v41  ;;  %652 = vst.msk [vmem:[%s1119_s2 + $0x110] sm:$0xff] %vm226_vm2, %v491_v42 }
  0xf0   :  { %v753_v43 = vpop.f32.mrb[12].mxu1  ;;  %v779_v44 = vpop.f32.mrb[12].mxu0 }
  0xf1   :  { %621 = vst.msk [vmem:[%s1119_s2 + $0xa8] sm:$0xff] %vm226_vm2, %v753_v43  ;;  %655 = vst.msk [vmem:[%s1119_s2 + $0x128] sm:$0xff] %vm226_vm2, %v779_v44  ;;  %v334_v45 = vpop.f32.mrb[13].mxu1  ;;  %v501_v46 = vpop.f32.mrb[13].mxu0 }
  0xf2   :  { %620 = vst.msk [vmem:[%s1119_s2 + $0xa0] sm:$0xff] %vm226_vm2, %v334_v45  ;;  %654 = vst.msk [vmem:[%s1119_s2 + $0x120] sm:$0xff] %vm226_vm2, %v501_v46 }
  0xf4   :  { %v756_v47 = vpop.f32.mrb[14].mxu1  ;;  %v782_v48 = vpop.f32.mrb[14].mxu0 }
  0xf5   :  { %623 = vst.msk [vmem:[%s1119_s2 + $0xb8] sm:$0xff] %vm226_vm2, %v756_v47  ;;  %657 = vst.msk [vmem:[%s1119_s2 + $0x138] sm:$0xff] %vm226_vm2, %v782_v48  ;;  %v344_v49 = vpop.f32.mrb[15].mxu1  ;;  %v511_v50 = vpop.f32.mrb[15].mxu0 }
  0xf6   :  { %622 = vst.msk [vmem:[%s1119_s2 + $0xb0] sm:$0xff] %vm226_vm2, %v344_v49  ;;  %656 = vst.msk [vmem:[%s1119_s2 + $0x130] sm:$0xff] %vm226_vm2, %v511_v50 }
  0xf8   :  { %v759_v51 = vpop.f32.mrb[16].mxu1  ;;  %v785_v52 = vpop.f32.mrb[16].mxu0 }
  0xf9   :  { %625 = vst.msk [vmem:[%s1119_s2 + $0xc8] sm:$0xff] %vm226_vm2, %v759_v51  ;;  %659 = vst.msk [vmem:[%s1119_s2 + $0x148] sm:$0xff] %vm226_vm2, %v785_v52  ;;  %v354_v53 = vpop.f32.mrb[17].mxu1  ;;  %v521_v54 = vpop.f32.mrb[17].mxu0 }
  0xfa   :  { %624 = vst.msk [vmem:[%s1119_s2 + $0xc0] sm:$0xff] %vm226_vm2, %v354_v53  ;;  %658 = vst.msk [vmem:[%s1119_s2 + $0x140] sm:$0xff] %vm226_vm2, %v521_v54 }
  0xfc   :  { %v762_v55 = vpop.f32.mrb[18].mxu1  ;;  %v788_v56 = vpop.f32.mrb[18].mxu0 }
  0xfd   :  { %627 = vst.msk [vmem:[%s1119_s2 + $0xd8] sm:$0xff] %vm226_vm2, %v762_v55  ;;  %661 = vst.msk [vmem:[%s1119_s2 + $0x158] sm:$0xff] %vm226_vm2, %v788_v56  ;;  %v364_v57 = vpop.f32.mrb[19].mxu1  ;;  %v531_v58 = vpop.f32.mrb[19].mxu0 }
  0xfe   :  { %626 = vst.msk [vmem:[%s1119_s2 + $0xd0] sm:$0xff] %vm226_vm2, %v364_v57  ;;  %660 = vst.msk [vmem:[%s1119_s2 + $0x150] sm:$0xff] %vm226_vm2, %v531_v58 }
 0x100   :  { %v765_v59 = vpop.f32.mrb[20].mxu1  ;;  %v791_v60 = vpop.f32.mrb[20].mxu0 }
 0x101   :  { %629 = vst.msk [vmem:[%s1119_s2 + $0xe8] sm:$0xff] %vm226_vm2, %v765_v59  ;;  %663 = vst.msk [vmem:[%s1119_s2 + $0x168] sm:$0xff] %vm226_vm2, %v791_v60  ;;  %v374_v61 = vpop.f32.mrb[21].mxu1  ;;  %v541_v62 = vpop.f32.mrb[21].mxu0 }
 0x102   :  { %628 = vst.msk [vmem:[%s1119_s2 + $0xe0] sm:$0xff] %vm226_vm2, %v374_v61  ;;  %662 = vst.msk [vmem:[%s1119_s2 + $0x160] sm:$0xff] %vm226_vm2, %v541_v62 }
 0x104   :  { %v768_v63 = vpop.f32.mrb[22].mxu1  ;;  %v794_v0 = vpop.f32.mrb[22].mxu0 }
 0x105   :  { %631 = vst.msk [vmem:[%s1119_s2 + $0xf8] sm:$0xff] %vm226_vm2, %v768_v63  ;;  %665 = vst.msk [vmem:[%s1119_s2 + $0x178] sm:$0xff] %vm226_vm2, %v794_v0  ;;  %v384_v1 = vpop.f32.mrb[23].mxu1  ;;  %v551_v2 = vpop.f32.mrb[23].mxu0 }
 0x106   :  { %630 = vst.msk [vmem:[%s1119_s2 + $0xf0] sm:$0xff] %vm226_vm2, %v384_v1  ;;  %664 = vst.msk [vmem:[%s1119_s2 + $0x170] sm:$0xff] %vm226_vm2, %v551_v2 }

</bundles_post_ra>
